<compile_context>
chip_gen: v6e
topology: v6e:2x2x1
jax: 0.10.0
libtpu: 0.0.40
codegen_flags: <defaults>
</compile_context>

<pallas_src>
import functools

import jax
import jax.numpy as jnp
import numpy as np
from jax.experimental import pallas as pl
from jax.experimental.pallas import tpu as pltpu

_NEG = -1e30  # finite "-inf" fill for padded class lanes (0 * _NEG == 0, no NaN)


def _ride_kernel(elogits_ref, xlogits_ref, tgt_ref, margin_ref, wrow_ref,
                 invt_ref, out_ref, *, n_valid, tile_n, unit_temp):
    # elogits_ref : (E, TILE_N, C) VMEM  expert logits (streamed dtype, widened here)
    # xlogits_ref : (TILE_N, C)    VMEM  aggregated output logits (teacher)
    # tgt_ref     : (TILE_N, 1)    VMEM  int32 class targets
    # margin_ref  : (TILE_N, 1)    VMEM  f32 s * m_list[target]
    # wrow_ref    : (TILE_N, 1)    VMEM  f32 per-sample CE weight (0 on padded rows)
    # invt_ref    : (1, C)         VMEM  1 / diversity_temperature per class
    # out_ref     : (1, 8, 128)    VMEM  partial sums for this tile (sublane 0):
    #                lane 0        -> sum of CE sample weights
    #                lanes 1..E    -> per-expert weighted CE sums
    #                lanes E+1..2E -> per-expert KL sums
    E = elogits_ref.shape[0]
    T = elogits_ref.shape[1]
    C = elogits_ref.shape[2]
    pid = pl.program_id(0)

    tgt = tgt_ref[...]                                              # (T, 1) int32
    iota_c = jax.lax.broadcasted_iota(jnp.int32, (T, C), 1)
    mask = iota_c == tgt                                            # target-lane mask

    # rows beyond the real batch (N rounded up to a tile multiple) -> masked
    row = pid * tile_n + jax.lax.broadcasted_iota(jnp.int32, (T, 1), 0)
    valid = (row < n_valid).astype(jnp.float32)                     # (T, 1)

    margin = margin_ref[...]                                        # (T, 1)
    w_row = wrow_ref[...]                                           # (T, 1) 0 on pad rows
    invt = invt_ref[...]                                            # (1, C)

    # ---- teacher softmax(output_logits / T): computed once, shared by experts.
    #      Folded form: p_t / log p_t never materialized as (T, C).
    x = xlogits_ref[...].astype(jnp.float32)
    if not unit_temp:
        x = x * invt
    mx = jnp.max(x, axis=-1, keepdims=True)
    ex = jnp.exp(x - mx)                                            # (T, C)
    sx = jnp.sum(ex, axis=-1, keepdims=True)
    inv_sx = 1.0 / sx                                               # (T, 1) cheap exact divide
    log_sx = jnp.log(sx)
    ent = jnp.sum(ex * (x - mx), axis=-1, keepdims=True) * inv_sx - log_sx
    ex_i = ex if unit_temp else ex * invt                           # for cross = sum(ex_i*l)/sx

    ce_parts, kl_parts = [], []
    for e in range(E):                                              # static unrolled loop
        l = elogits_ref[e].astype(jnp.float32)                      # (T, C)
        tgt_logit = jnp.sum(jnp.where(mask, l, 0.0), axis=-1, keepdims=True)

        if unit_temp:
            # one shared exp(l - max(l)) serves both the KL softmax and the CE
            # softmax; the LDAM margin only shifts the target lane, corrected
            # with a (T, 1) exp instead of a second (T, C) exp/max.
            m0 = jnp.max(l, axis=-1, keepdims=True)
            exl = jnp.exp(l - m0)                                   # (T, C) single exp
            ss = jnp.sum(exl, axis=-1, keepdims=True)
            e_tgt_a = jnp.exp(tgt_logit - margin - m0)              # (T, 1)
            sa = jnp.sum(jnp.where(mask, e_tgt_a, exl), axis=-1, keepdims=True)
            lse_a = m0 + jnp.log(sa)
            # cross = sum(p_t * log_softmax(l)) folded (sum(p_t) == 1)
            cross = jnp.sum(ex * l, axis=-1, keepdims=True) * inv_sx - m0 - jnp.log(ss)
        else:
            # general per-class temperature path
            la = jnp.where(mask, l - margin, l)                     # margin-adjusted logits
            ma = jnp.max(la, axis=-1, keepdims=True)
            sa = jnp.sum(jnp.exp(la - ma), axis=-1, keepdims=True)
            lse_a = ma + jnp.log(sa)
            ls = l * invt
            ms = jnp.max(ls, axis=-1, keepdims=True)
            ss = jnp.sum(jnp.exp(ls - ms), axis=-1, keepdims=True)
            cross = jnp.sum(ex_i * l, axis=-1, keepdims=True) * inv_sx - ms - jnp.log(ss)

        # weighted-CE numerator and KL numerator for this tile
        ce_parts.append(jnp.sum(w_row * (lse_a - (tgt_logit - margin))))
        kl_parts.append(jnp.sum((ent - cross) * valid))

    scalars = [jnp.sum(w_row)] + ce_parts + kl_parts

    # lane-dense partial-sum slab; selects run on one (1, 128) vreg, then the
    # row is sublane-broadcast (wrapper only reads sublane 0).
    lane = jax.lax.broadcasted_iota(jnp.int32, (1, 128), 1)
    row0 = jnp.zeros((1, 128), jnp.float32)
    for k, v in enumerate(scalars):
        row0 = jnp.where(lane == k, v, row0)
    out_ref[...] = jnp.broadcast_to(row0, (8, 128))[None]


def _ride_partial_sums(expert_logits, output_logits, target, margin_row, w_row,
                       inv_temp_vec, *, unit_temp, tile_n=None, stream_bf16=False):
    """Run the gridded kernel; return (w_sum, ce_sums[E], kl_sums[E]) over the batch."""
    E, N, C = expert_logits.shape
    assert output_logits.shape == (N, C)
    assert target.shape == (N,)
    assert 1 + 2 * E <= 128, "too many experts for one partial-sum row"

    el, ol = expert_logits, output_logits
    if stream_bf16 and el.dtype == jnp.float32:
        # optional HBM-bandwidth saver (v5e); all in-kernel math stays f32
        el = el.astype(jnp.bfloat16)
        ol = ol.astype(jnp.bfloat16)

    def rup(a, b):
        return -(-a // b) * b

    c_pad = rup(C, 128)
    itemsize = max(jnp.dtype(el.dtype).itemsize, jnp.dtype(ol.dtype).itemsize)
    # sublane multiple matching the packed tiling of the streamed dtype
    sub = 32 if itemsize == 1 else (16 if itemsize == 2 else 8)

    try:
        vmem_cap = int(getattr(pltpu.get_tpu_info(), "vmem_capacity_bytes", 64 << 20))
    except Exception:
        vmem_cap = 64 << 20
    big_vmem = vmem_cap >= (100 << 20)          # v5e / v6e: 128 MiB per core

    if tile_n is None:
        # largest batch tile whose streamed logits fit the per-buffer budget ...
        budget = (8 << 20) if big_vmem else (4 << 20)
        row_bytes = (E + 1) * c_pad * itemsize
        tile_n = max(sub, min(1024, (int(budget // row_bytes) // sub) * sub))
        # ... but keep the grid >= 4 steps so the pipeline overlaps DMA with
        # compute and the "parallel" axis can split across v7x's 2 TensorCores.
        cap = max(sub, rup(-(-N // 4), sub))
        tile_n = min(tile_n, cap)
        nt = -(-N // tile_n)
        if nt > 1 and nt % 2 == 1:              # prefer an even step count
            alt = max(sub, rup(-(-N // (nt + 1)), sub))
            if (-(-N // alt)) % 2 == 0:
                tile_n = alt
    else:
        tile_n = max(sub, (int(tile_n) // sub) * sub)
    tile_n = min(tile_n, rup(N, sub))
    n_pad = rup(N, tile_n)
    num_tiles = n_pad // tile_n

    if c_pad != C:   # padded classes: large-negative logits -> exp()==0, mask==0
        el = jnp.pad(el, ((0, 0), (0, 0), (0, c_pad - C)), constant_values=_NEG)
        ol = jnp.pad(ol, ((0, 0), (0, c_pad - C)), constant_values=_NEG)
    if n_pad != N:   # padded rows: zero weight + in-kernel validity mask
        el = jnp.pad(el, ((0, 0), (0, n_pad - N), (0, 0)))
        ol = jnp.pad(ol, ((0, n_pad - N), (0, 0)))

    tgt = target.astype(jnp.int32).reshape(N, 1)
    mrg = jnp.asarray(margin_row, jnp.float32).reshape(N, 1)
    wrw = jnp.asarray(w_row, jnp.float32).reshape(N, 1)
    if n_pad != N:
        tgt = jnp.pad(tgt, ((0, n_pad - N), (0, 0)))
        mrg = jnp.pad(mrg, ((0, n_pad - N), (0, 0)))
        wrw = jnp.pad(wrw, ((0, n_pad - N), (0, 0)))

    inv_t = jnp.asarray(inv_temp_vec, jnp.float32).reshape(1, C)
    if c_pad != C:
        inv_t = jnp.pad(inv_t, ((0, 0), (0, c_pad - C)), constant_values=1.0)

    kernel = functools.partial(_ride_kernel, n_valid=N, tile_n=tile_n,
                               unit_temp=bool(unit_temp))

    grid_spec = pltpu.PrefetchScalarGridSpec(
        num_scalar_prefetch=0,
        grid=(num_tiles,),
        in_specs=[
            pl.BlockSpec((E, tile_n, c_pad), lambda i: (0, i, 0)),   # expert logits
            pl.BlockSpec((tile_n, c_pad), lambda i: (i, 0)),         # teacher logits
            pl.BlockSpec((tile_n, 1), lambda i: (i, 0)),             # targets
            pl.BlockSpec((tile_n, 1), lambda i: (i, 0)),             # s*m_list[target]
            pl.BlockSpec((tile_n, 1), lambda i: (i, 0)),             # w_base[target]
            pl.BlockSpec((1, c_pad), lambda i: (0, 0)),              # 1 / temperature
        ],
        out_specs=pl.BlockSpec((1, 8, 128), lambda i: (i, 0, 0)),
    )

    tile_bytes_f32 = tile_n * c_pad * 4
    in_bytes = (E + 1) * tile_n * c_pad * itemsize + 3 * tile_n * 4 + c_pad * 4
    # v7x: leave headroom in its 64 MiB/core VMEM; v5e/v6e can go higher.
    ceiling = (100 << 20) if big_vmem else (56 << 20)
    vmem_limit = int(min(ceiling,
                         max(32 << 20,
                             2 * in_bytes + 12 * tile_bytes_f32 + (2 << 20))))

    partials = pl.pallas_call(
        kernel,
        out_shape=jax.ShapeDtypeStruct((num_tiles, 8, 128), jnp.float32),
        grid_spec=grid_spec,
        compiler_params=pltpu.CompilerParams(
            dimension_semantics=("parallel",),
            vmem_limit_bytes=vmem_limit),
    )(el, ol, tgt, mrg, wrw, inv_t)

    sums = jnp.sum(partials[:, 0, :], axis=0)          # (128,)
    w_sum = sums[0]
    ce_sums = sums[1:1 + E]
    kl_sums = sums[1 + E:1 + 2 * E]
    return w_sum, ce_sums, kl_sums


def ride_loss(output_logits, target, expert_logits=None, *,
              m_list=None, s=30.0,
              per_cls_weights_base=None, per_cls_weights_diversity=None,
              base_diversity_temperature=1.0,
              base_loss_factor=1.0, additional_diversity_factor=-0.2,
              tile_n=None, stream_bf16=False):
    """RIDELoss.forward.  expert_logits (E, N, C) plays the role of extra_info['logits']."""
    N, C = output_logits.shape
    tgt = jnp.asarray(target).astype(jnp.int32)
    ones_c = jnp.ones((C,), jnp.float32)

    if expert_logits is None:
        # forward(..., extra_info=None): plain unweighted cross entropy
        w_sum, ce_sums, _ = _ride_partial_sums(
            output_logits[None], output_logits, tgt,
            jnp.zeros((N,), jnp.float32), jnp.ones((N,), jnp.float32), ones_c,
            unit_temp=True, tile_n=tile_n, stream_bf16=stream_bf16)
        return ce_sums[0] / w_sum

    E = expert_logits.shape[0]

    # per-sample margin / CE weight gathered host-side (removes two (T,C)
    # multiplies + lane reductions per tile from the kernel)
    if m_list is None:
        margin_row = jnp.zeros((N,), jnp.float32)
        w_row = jnp.ones((N,), jnp.float32)
    else:
        s_m = jnp.asarray(m_list, jnp.float32) * jnp.float32(s)
        margin_row = jnp.take(s_m, tgt)
        # F.cross_entropy with weight=None == all-ones weights (matches module)
        if per_cls_weights_base is None:
            w_row = jnp.ones((N,), jnp.float32)
        else:
            w_row = jnp.take(jnp.asarray(per_cls_weights_base, jnp.float32), tgt)

    if per_cls_weights_diversity is not None:
        div_t = jnp.float32(base_diversity_temperature) * \
            jnp.asarray(per_cls_weights_diversity, jnp.float32)
        temperature_mean = jnp.mean(div_t)
        inv_t = 1.0 / div_t
        unit_temp = False
    else:
        temperature_mean = jnp.float32(base_diversity_temperature)
        inv_t = jnp.full((C,), 1.0 / float(base_diversity_temperature), jnp.float32)
        unit_temp = float(base_diversity_temperature) == 1.0

    if additional_diversity_factor == 0:
        # CE is taken on output_logits for every expert and the KL term is
        # multiplied by 0 -> run a single-expert kernel and scale the CE by E
        # (avoids materializing E identical (N, C) copies in HBM).
        w_sum, ce_sums, _ = _ride_partial_sums(
            output_logits[None], output_logits, tgt, margin_row, w_row, inv_t,
            unit_temp=unit_temp, tile_n=tile_n, stream_bf16=stream_bf16)
        return jnp.float32(E) * base_loss_factor * (ce_sums[0] / w_sum)

    w_sum, ce_sums, kl_sums = _ride_partial_sums(
        expert_logits, output_logits, tgt, margin_row, w_row, inv_t,
        unit_temp=unit_temp, tile_n=tile_n, stream_bf16=stream_bf16)

    # CE weighted-mean (divide once by global w_sum) + KL 'batchmean' (divide by N)
    loss = jnp.sum(base_loss_factor * (ce_sums / w_sum)
                   + additional_diversity_factor * temperature_mean * temperature_mean
                   * (kl_sums / jnp.float32(N)))
    return loss


def make_ride_state(cls_num_list, epoch, *, max_m=0.5, reweight=True,
                    reweight_epoch=-1, reweight_factor=0.05):
    """Mirror RIDELoss.__init__ + _hook_before_epoch host-side precomputation."""
    cls = np.asarray(cls_num_list, np.float64)
    m_list = 1.0 / np.sqrt(np.sqrt(cls))
    m_list = m_list * (max_m / np.max(m_list))

    if not reweight:
        reweight_epoch = -1
    per_cls_weights_enabled = None
    if reweight_epoch != -1:
        beta = 0.9999
        effective_num = 1.0 - np.power(beta, cls)
        w = (1.0 - beta) / effective_num
        w = w / np.sum(w) * len(cls)
        per_cls_weights_enabled = w

    p = cls / np.sum(cls)
    w_div = len(cls) * p * reweight_factor + 1 - reweight_factor
    w_div = w_div / np.max(w_div)
    assert np.all(w_div > 0)

    if reweight_epoch != -1 and epoch > reweight_epoch:
        w_base, w_diversity = per_cls_weights_enabled, w_div
    else:
        w_base, w_diversity = None, None

    return (jnp.asarray(m_list, jnp.float32),
            None if w_base is None else jnp.asarray(w_base, jnp.float32),
            None if w_diversity is None else jnp.asarray(w_diversity, jnp.float32))


def _ride_loss_ref(output_logits, target, expert_logits, m_list, s,
                   w_base, w_div, base_t, base_loss_factor, add_div_factor):
    """Pure-JAX reference mirroring the PyTorch forward (for validation)."""
    E, N, C = expert_logits.shape
    onehot = jax.nn.one_hot(target, C, dtype=jnp.float32)
    ol = output_logits.astype(jnp.float32)
    if w_div is not None:
        div_t = base_t * w_div[None, :].astype(jnp.float32)
        t_mean = jnp.mean(div_t)
    else:
        div_t = jnp.float32(base_t)
        t_mean = jnp.float32(base_t)
    log_p_teacher = jax.nn.log_softmax(ol / div_t, axis=1)
    p_teacher = jnp.exp(log_p_teacher)
    loss = jnp.float32(0.0)
    for e in range(E):
        l = expert_logits[e].astype(jnp.float32)
        if m_list is not None:
            margin = (onehot * m_list[None, :]).sum(axis=1, keepdims=True) * s
            la = l - onehot * margin
        else:
            la = l
        logp = jax.nn.log_softmax(la, axis=1)
        nll = -(logp * onehot).sum(axis=1)
        if m_list is not None and w_base is not None:
            wr = (onehot * w_base[None, :]).sum(axis=1)
            ce = jnp.sum(wr * nll) / jnp.sum(wr)
        else:
            ce = jnp.mean(nll)
        loss = loss + base_loss_factor * ce
        logq = jax.nn.log_softmax(l / div_t, axis=1)
        kl = jnp.sum(p_teacher * (log_p_teacher - logq)) / N
        loss = loss + add_div_factor * t_mean * t_mean * kl
    return loss


if __name__ == "__main__":
    key = jax.random.PRNGKey(0)
    k1, k2 = jax.random.split(key)

    # small shapes; C not a multiple of 128 and N not a multiple of the tile so
    # the class-padding and row-masking paths are exercised
    E, N, C = 3, 30, 100
    cls_num_list = np.round(np.geomspace(1000.0, 10.0, C))        # long-tailed counts
    expert_logits = 2.0 * jax.random.normal(k1, (E, N, C), jnp.float32)
    output_logits = jnp.mean(expert_logits, axis=0)               # RIDE aggregate output
    target = jax.random.randint(k2, (N,), 0, C)

    # (a) reweight active (epoch > reweight_epoch): per-class CE weights and
    #     per-class diversity temperature -> general kernel path, auto tile_n
    m_list, w_base, w_div = make_ride_state(cls_num_list, epoch=170, reweight_epoch=160)
    loss_a = ride_loss(output_logits, target, expert_logits,
                       m_list=m_list, s=30.0,
                       per_cls_weights_base=w_base,
                       per_cls_weights_diversity=w_div,
                       base_diversity_temperature=1.0,
                       base_loss_factor=1.0,
                       additional_diversity_factor=-0.2)
    loss_a = jax.block_until_ready(loss_a)
    ref_a = _ride_loss_ref(output_logits, target, expert_logits, m_list, 30.0,
                           w_base, w_div, 1.0, 1.0, -0.2)
    ref_a = jax.block_until_ready(ref_a)
    assert loss_a.shape == () and bool(jnp.isfinite(loss_a))
    np.testing.assert_allclose(np.asarray(loss_a), np.asarray(ref_a),
                               rtol=1e-3, atol=1e-3)

    # (b) reweight inactive (epoch <= reweight_epoch): unit temperature, no class
    #     weights -> shared-exp fast path, explicit tile_n
    m_list_b, w_base_b, w_div_b = make_ride_state(cls_num_list, epoch=100, reweight_epoch=160)
    loss_b = ride_loss(output_logits, target, expert_logits,
                       m_list=m_list_b, s=30.0,
                       per_cls_weights_base=w_base_b,
                       per_cls_weights_diversity=w_div_b,
                       base_diversity_temperature=1.0,
                       base_loss_factor=1.0,
                       additional_diversity_factor=-0.2,
                       tile_n=16)
    loss_b = jax.block_until_ready(loss_b)
    ref_b = _ride_loss_ref(output_logits, target, expert_logits, m_list_b, 30.0,
                           w_base_b, w_div_b, 1.0, 1.0, -0.2)
    ref_b = jax.block_until_ready(ref_b)
    assert loss_b.shape == () and bool(jnp.isfinite(loss_b))
    np.testing.assert_allclose(np.asarray(loss_b), np.asarray(ref_b),
                               rtol=1e-3, atol=1e-3)

    # (c) extra_info=None path: plain cross entropy on the aggregated logits
    loss_c = jax.block_until_ready(ride_loss(output_logits, target))
    logp = jax.nn.log_softmax(output_logits.astype(jnp.float32), axis=1)
    ref_c = jnp.mean(-jnp.take_along_axis(logp, target[:, None], axis=1))
    np.testing.assert_allclose(np.asarray(loss_c), np.asarray(ref_c),
                               rtol=1e-3, atol=1e-3)

    print("KERNEL_OK")
</pallas_src>

<mosaic_0001>
module attributes {stable_mosaic.version = 11 : i64} {
  func.func @_ride_kernel(%arg0: i32, %arg1: memref<3x8x128xf32, #tpu.memory_space<vmem>>, %arg2: memref<8x128xf32, #tpu.memory_space<vmem>>, %arg3: memref<8x1xi32, #tpu.memory_space<vmem>>, %arg4: memref<8x1xf32, #tpu.memory_space<vmem>>, %arg5: memref<8x1xf32, #tpu.memory_space<vmem>>, %arg6: memref<1x128xf32, #tpu.memory_space<vmem>>, %arg7: memref<1x8x128xf32, #tpu.memory_space<vmem>>) attributes {dimension_semantics = [#tpu.dimension_semantics<parallel>], iteration_bounds = array<i64: 4>, scalar_prefetch = 0 : i64, scratch_operands = 0 : i64, tpu.core_type = #tpu.core_type<tc>, window_params = [{transform_indices = @transform_0, window_bounds = array<i64: 3, 8, 128>}, {transform_indices = @transform_1, window_bounds = array<i64: 8, 128>}, {transform_indices = @transform_2, window_bounds = array<i64: 8, 1>}, {transform_indices = @transform_3, window_bounds = array<i64: 8, 1>}, {transform_indices = @transform_4, window_bounds = array<i64: 8, 1>}, {pipeline_mode = #tpu.pipeline_mode<synchronous>, transform_indices = @transform_5, window_bounds = array<i64: 1, 128>}, {transform_indices = @transform_6, window_bounds = array<i64: 1, 8, 128>}]} {
    %c0 = arith.constant 0 : index
    %c0_0 = arith.constant 0 : index
    %0 = vector.load %arg3[%c0, %c0_0] : memref<8x1xi32, #tpu.memory_space<vmem>>, vector<8x1xi32>
    %1 = tpu.iota {dimensions = array<i32: 1>} : vector<8x128xi32>
    %2 = vector.broadcast %0 : vector<8x1xi32> to vector<8x128xi32>
    %3 = arith.cmpi eq, %1, %2 : vector<8x128xi32>
    %c8_i32 = arith.constant 8 : i32
    %4 = arith.muli %arg0, %c8_i32 : i32
    %5 = tpu.iota {dimensions = array<i32: 0>} : vector<8x1xi32>
    %6 = vector.broadcast %4 : i32 to vector<8x1xi32>
    %7 = arith.addi %6, %5 : vector<8x1xi32>
    %c30_i32 = arith.constant 30 : i32
    %8 = vector.broadcast %c30_i32 : i32 to vector<8x1xi32>
    %9 = arith.cmpi slt, %7, %8 : vector<8x1xi32>
    %10 = arith.extui %9 : vector<8x1xi1> to vector<8x1xi32>
    %11 = arith.sitofp %10 : vector<8x1xi32> to vector<8x1xf32>
    %c0_1 = arith.constant 0 : index
    %c0_2 = arith.constant 0 : index
    %12 = vector.load %arg4[%c0_1, %c0_2] : memref<8x1xf32, #tpu.memory_space<vmem>>, vector<8x1xf32>
    %c0_3 = arith.constant 0 : index
    %c0_4 = arith.constant 0 : index
    %13 = vector.load %arg5[%c0_3, %c0_4] : memref<8x1xf32, #tpu.memory_space<vmem>>, vector<8x1xf32>
    %c0_5 = arith.constant 0 : index
    %c0_6 = arith.constant 0 : index
    %14 = vector.load %arg6[%c0_5, %c0_6] : memref<1x128xf32, #tpu.memory_space<vmem>>, vector<1x128xf32>
    %c0_7 = arith.constant 0 : index
    %c0_8 = arith.constant 0 : index
    %15 = vector.load %arg2[%c0_7, %c0_8] : memref<8x128xf32, #tpu.memory_space<vmem>>, vector<8x128xf32>
    %16 = vector.broadcast %14 : vector<1x128xf32> to vector<8x128xf32>
    %17 = arith.mulf %15, %16 : vector<8x128xf32>
    %cst = arith.constant dense<0xFF800000> : vector<8xf32>
    %18 = vector.multi_reduction <maximumf>, %17, %cst [1] : vector<8x128xf32> to vector<8xf32>
    %19 = vector.shape_cast %18 : vector<8xf32> to vector<8x1xf32>
    %20 = vector.broadcast %19 : vector<8x1xf32> to vector<8x128xf32>
    %21 = arith.subf %17, %20 : vector<8x128xf32>
    %22 = math.exp %21 : vector<8x128xf32>
    %cst_9 = arith.constant dense<0.000000e+00> : vector<8xf32>
    %23 = vector.multi_reduction <add>, %22, %cst_9 [1] : vector<8x128xf32> to vector<8xf32>
    %24 = vector.shape_cast %23 : vector<8xf32> to vector<8x1xf32>
    %cst_10 = arith.constant 1.000000e+00 : f32
    %25 = vector.broadcast %cst_10 : f32 to vector<8x1xf32>
    %26 = arith.divf %25, %24 : vector<8x1xf32>
    %27 = math.log %24 : vector<8x1xf32>
    %28 = vector.broadcast %19 : vector<8x1xf32> to vector<8x128xf32>
    %29 = arith.subf %17, %28 : vector<8x128xf32>
    %30 = arith.mulf %22, %29 : vector<8x128xf32>
    %cst_11 = arith.constant dense<0.000000e+00> : vector<8xf32>
    %31 = vector.multi_reduction <add>, %30, %cst_11 [1] : vector<8x128xf32> to vector<8xf32>
    %32 = vector.shape_cast %31 : vector<8xf32> to vector<8x1xf32>
    %33 = arith.mulf %32, %26 : vector<8x1xf32>
    %34 = arith.subf %33, %27 : vector<8x1xf32>
    %35 = vector.broadcast %14 : vector<1x128xf32> to vector<8x128xf32>
    %36 = arith.mulf %22, %35 : vector<8x128xf32>
    %c0_12 = arith.constant 0 : index
    %c0_13 = arith.constant 0 : index
    %c0_14 = arith.constant 0 : index
    %37 = vector.load %arg1[%c0_12, %c0_13, %c0_14] : memref<3x8x128xf32, #tpu.memory_space<vmem>>, vector<1x8x128xf32>
    %38 = vector.shape_cast %37 : vector<1x8x128xf32> to vector<8x128xf32>
    %cst_15 = arith.constant 0.000000e+00 : f32
    %39 = vector.broadcast %cst_15 : f32 to vector<8x128xf32>
    %40 = arith.select %3, %38, %39 : vector<8x128xi1>, vector<8x128xf32>
    %cst_16 = arith.constant dense<0.000000e+00> : vector<8xf32>
    %41 = vector.multi_reduction <add>, %40, %cst_16 [1] : vector<8x128xf32> to vector<8xf32>
    %42 = vector.shape_cast %41 : vector<8xf32> to vector<8x1xf32>
    %43 = vector.broadcast %12 : vector<8x1xf32> to vector<8x128xf32>
    %44 = arith.subf %38, %43 : vector<8x128xf32>
    %45 = arith.select %3, %44, %38 : vector<8x128xi1>, vector<8x128xf32>
    %cst_17 = arith.constant dense<0xFF800000> : vector<8xf32>
    %46 = vector.multi_reduction <maximumf>, %45, %cst_17 [1] : vector<8x128xf32> to vector<8xf32>
    %47 = vector.shape_cast %46 : vector<8xf32> to vector<8x1xf32>
    %48 = vector.broadcast %47 : vector<8x1xf32> to vector<8x128xf32>
    %49 = arith.subf %45, %48 : vector<8x128xf32>
    %50 = math.exp %49 : vector<8x128xf32>
    %cst_18 = arith.constant dense<0.000000e+00> : vector<8xf32>
    %51 = vector.multi_reduction <add>, %50, %cst_18 [1] : vector<8x128xf32> to vector<8xf32>
    %52 = vector.shape_cast %51 : vector<8xf32> to vector<8x1xf32>
    %53 = math.log %52 : vector<8x1xf32>
    %54 = arith.addf %47, %53 : vector<8x1xf32>
    %55 = vector.broadcast %14 : vector<1x128xf32> to vector<8x128xf32>
    %56 = arith.mulf %38, %55 : vector<8x128xf32>
    %cst_19 = arith.constant dense<0xFF800000> : vector<8xf32>
    %57 = vector.multi_reduction <maximumf>, %56, %cst_19 [1] : vector<8x128xf32> to vector<8xf32>
    %58 = vector.shape_cast %57 : vector<8xf32> to vector<8x1xf32>
    %59 = vector.broadcast %58 : vector<8x1xf32> to vector<8x128xf32>
    %60 = arith.subf %56, %59 : vector<8x128xf32>
    %61 = math.exp %60 : vector<8x128xf32>
    %cst_20 = arith.constant dense<0.000000e+00> : vector<8xf32>
    %62 = vector.multi_reduction <add>, %61, %cst_20 [1] : vector<8x128xf32> to vector<8xf32>
    %63 = vector.shape_cast %62 : vector<8xf32> to vector<8x1xf32>
    %64 = arith.mulf %36, %38 : vector<8x128xf32>
    %cst_21 = arith.constant dense<0.000000e+00> : vector<8xf32>
    %65 = vector.multi_reduction <add>, %64, %cst_21 [1] : vector<8x128xf32> to vector<8xf32>
    %66 = vector.shape_cast %65 : vector<8xf32> to vector<8x1xf32>
    %67 = arith.mulf %66, %26 : vector<8x1xf32>
    %68 = arith.subf %67, %58 : vector<8x1xf32>
    %69 = math.log %63 : vector<8x1xf32>
    %70 = arith.subf %68, %69 : vector<8x1xf32>
    %71 = arith.subf %42, %12 : vector<8x1xf32>
    %72 = arith.subf %54, %71 : vector<8x1xf32>
    %73 = arith.mulf %13, %72 : vector<8x1xf32>
    %74 = vector.shape_cast %73 : vector<8x1xf32> to vector<1x8x1xf32>
    %cst_22 = arith.constant dense<0.000000e+00> : vector<1xf32>
    %75 = vector.multi_reduction <add>, %74, %cst_22 [1, 2] : vector<1x8x1xf32> to vector<1xf32>
    %76 = vector.shape_cast %75 : vector<1xf32> to vector<1x1x1xf32>
    %77 = vector.extract %76[0, 0, 0] : f32 from vector<1x1x1xf32>
    %78 = arith.subf %34, %70 : vector<8x1xf32>
    %79 = arith.mulf %78, %11 : vector<8x1xf32>
    %80 = vector.shape_cast %79 : vector<8x1xf32> to vector<1x8x1xf32>
    %cst_23 = arith.constant dense<0.000000e+00> : vector<1xf32>
    %81 = vector.multi_reduction <add>, %80, %cst_23 [1, 2] : vector<1x8x1xf32> to vector<1xf32>
    %82 = vector.shape_cast %81 : vector<1xf32> to vector<1x1x1xf32>
    %83 = vector.extract %82[0, 0, 0] : f32 from vector<1x1x1xf32>
    %c1 = arith.constant 1 : index
    %c0_24 = arith.constant 0 : index
    %c0_25 = arith.constant 0 : index
    %84 = vector.load %arg1[%c1, %c0_24, %c0_25] : memref<3x8x128xf32, #tpu.memory_space<vmem>>, vector<1x8x128xf32>
    %85 = vector.shape_cast %84 : vector<1x8x128xf32> to vector<8x128xf32>
    %cst_26 = arith.constant 0.000000e+00 : f32
    %86 = vector.broadcast %cst_26 : f32 to vector<8x128xf32>
    %87 = arith.select %3, %85, %86 : vector<8x128xi1>, vector<8x128xf32>
    %cst_27 = arith.constant dense<0.000000e+00> : vector<8xf32>
    %88 = vector.multi_reduction <add>, %87, %cst_27 [1] : vector<8x128xf32> to vector<8xf32>
    %89 = vector.shape_cast %88 : vector<8xf32> to vector<8x1xf32>
    %90 = vector.broadcast %12 : vector<8x1xf32> to vector<8x128xf32>
    %91 = arith.subf %85, %90 : vector<8x128xf32>
    %92 = arith.select %3, %91, %85 : vector<8x128xi1>, vector<8x128xf32>
    %cst_28 = arith.constant dense<0xFF800000> : vector<8xf32>
    %93 = vector.multi_reduction <maximumf>, %92, %cst_28 [1] : vector<8x128xf32> to vector<8xf32>
    %94 = vector.shape_cast %93 : vector<8xf32> to vector<8x1xf32>
    %95 = vector.broadcast %94 : vector<8x1xf32> to vector<8x128xf32>
    %96 = arith.subf %92, %95 : vector<8x128xf32>
    %97 = math.exp %96 : vector<8x128xf32>
    %cst_29 = arith.constant dense<0.000000e+00> : vector<8xf32>
    %98 = vector.multi_reduction <add>, %97, %cst_29 [1] : vector<8x128xf32> to vector<8xf32>
    %99 = vector.shape_cast %98 : vector<8xf32> to vector<8x1xf32>
    %100 = math.log %99 : vector<8x1xf32>
    %101 = arith.addf %94, %100 : vector<8x1xf32>
    %102 = vector.broadcast %14 : vector<1x128xf32> to vector<8x128xf32>
    %103 = arith.mulf %85, %102 : vector<8x128xf32>
    %cst_30 = arith.constant dense<0xFF800000> : vector<8xf32>
    %104 = vector.multi_reduction <maximumf>, %103, %cst_30 [1] : vector<8x128xf32> to vector<8xf32>
    %105 = vector.shape_cast %104 : vector<8xf32> to vector<8x1xf32>
    %106 = vector.broadcast %105 : vector<8x1xf32> to vector<8x128xf32>
    %107 = arith.subf %103, %106 : vector<8x128xf32>
    %108 = math.exp %107 : vector<8x128xf32>
    %cst_31 = arith.constant dense<0.000000e+00> : vector<8xf32>
    %109 = vector.multi_reduction <add>, %108, %cst_31 [1] : vector<8x128xf32> to vector<8xf32>
    %110 = vector.shape_cast %109 : vector<8xf32> to vector<8x1xf32>
    %111 = arith.mulf %36, %85 : vector<8x128xf32>
    %cst_32 = arith.constant dense<0.000000e+00> : vector<8xf32>
    %112 = vector.multi_reduction <add>, %111, %cst_32 [1] : vector<8x128xf32> to vector<8xf32>
    %113 = vector.shape_cast %112 : vector<8xf32> to vector<8x1xf32>
    %114 = arith.mulf %113, %26 : vector<8x1xf32>
    %115 = arith.subf %114, %105 : vector<8x1xf32>
    %116 = math.log %110 : vector<8x1xf32>
    %117 = arith.subf %115, %116 : vector<8x1xf32>
    %118 = arith.subf %89, %12 : vector<8x1xf32>
    %119 = arith.subf %101, %118 : vector<8x1xf32>
    %120 = arith.mulf %13, %119 : vector<8x1xf32>
    %121 = vector.shape_cast %120 : vector<8x1xf32> to vector<1x8x1xf32>
    %cst_33 = arith.constant dense<0.000000e+00> : vector<1xf32>
    %122 = vector.multi_reduction <add>, %121, %cst_33 [1, 2] : vector<1x8x1xf32> to vector<1xf32>
    %123 = vector.shape_cast %122 : vector<1xf32> to vector<1x1x1xf32>
    %124 = vector.extract %123[0, 0, 0] : f32 from vector<1x1x1xf32>
    %125 = arith.subf %34, %117 : vector<8x1xf32>
    %126 = arith.mulf %125, %11 : vector<8x1xf32>
    %127 = vector.shape_cast %126 : vector<8x1xf32> to vector<1x8x1xf32>
    %cst_34 = arith.constant dense<0.000000e+00> : vector<1xf32>
    %128 = vector.multi_reduction <add>, %127, %cst_34 [1, 2] : vector<1x8x1xf32> to vector<1xf32>
    %129 = vector.shape_cast %128 : vector<1xf32> to vector<1x1x1xf32>
    %130 = vector.extract %129[0, 0, 0] : f32 from vector<1x1x1xf32>
    %c2 = arith.constant 2 : index
    %c0_35 = arith.constant 0 : index
    %c0_36 = arith.constant 0 : index
    %131 = vector.load %arg1[%c2, %c0_35, %c0_36] : memref<3x8x128xf32, #tpu.memory_space<vmem>>, vector<1x8x128xf32>
    %132 = vector.shape_cast %131 : vector<1x8x128xf32> to vector<8x128xf32>
    %cst_37 = arith.constant 0.000000e+00 : f32
    %133 = vector.broadcast %cst_37 : f32 to vector<8x128xf32>
    %134 = arith.select %3, %132, %133 : vector<8x128xi1>, vector<8x128xf32>
    %cst_38 = arith.constant dense<0.000000e+00> : vector<8xf32>
    %135 = vector.multi_reduction <add>, %134, %cst_38 [1] : vector<8x128xf32> to vector<8xf32>
    %136 = vector.shape_cast %135 : vector<8xf32> to vector<8x1xf32>
    %137 = vector.broadcast %12 : vector<8x1xf32> to vector<8x128xf32>
    %138 = arith.subf %132, %137 : vector<8x128xf32>
    %139 = arith.select %3, %138, %132 : vector<8x128xi1>, vector<8x128xf32>
    %cst_39 = arith.constant dense<0xFF800000> : vector<8xf32>
    %140 = vector.multi_reduction <maximumf>, %139, %cst_39 [1] : vector<8x128xf32> to vector<8xf32>
    %141 = vector.shape_cast %140 : vector<8xf32> to vector<8x1xf32>
    %142 = vector.broadcast %141 : vector<8x1xf32> to vector<8x128xf32>
    %143 = arith.subf %139, %142 : vector<8x128xf32>
    %144 = math.exp %143 : vector<8x128xf32>
    %cst_40 = arith.constant dense<0.000000e+00> : vector<8xf32>
    %145 = vector.multi_reduction <add>, %144, %cst_40 [1] : vector<8x128xf32> to vector<8xf32>
    %146 = vector.shape_cast %145 : vector<8xf32> to vector<8x1xf32>
    %147 = math.log %146 : vector<8x1xf32>
    %148 = arith.addf %141, %147 : vector<8x1xf32>
    %149 = vector.broadcast %14 : vector<1x128xf32> to vector<8x128xf32>
    %150 = arith.mulf %132, %149 : vector<8x128xf32>
    %cst_41 = arith.constant dense<0xFF800000> : vector<8xf32>
    %151 = vector.multi_reduction <maximumf>, %150, %cst_41 [1] : vector<8x128xf32> to vector<8xf32>
    %152 = vector.shape_cast %151 : vector<8xf32> to vector<8x1xf32>
    %153 = vector.broadcast %152 : vector<8x1xf32> to vector<8x128xf32>
    %154 = arith.subf %150, %153 : vector<8x128xf32>
    %155 = math.exp %154 : vector<8x128xf32>
    %cst_42 = arith.constant dense<0.000000e+00> : vector<8xf32>
    %156 = vector.multi_reduction <add>, %155, %cst_42 [1] : vector<8x128xf32> to vector<8xf32>
    %157 = vector.shape_cast %156 : vector<8xf32> to vector<8x1xf32>
    %158 = arith.mulf %36, %132 : vector<8x128xf32>
    %cst_43 = arith.constant dense<0.000000e+00> : vector<8xf32>
    %159 = vector.multi_reduction <add>, %158, %cst_43 [1] : vector<8x128xf32> to vector<8xf32>
    %160 = vector.shape_cast %159 : vector<8xf32> to vector<8x1xf32>
    %161 = arith.mulf %160, %26 : vector<8x1xf32>
    %162 = arith.subf %161, %152 : vector<8x1xf32>
    %163 = math.log %157 : vector<8x1xf32>
    %164 = arith.subf %162, %163 : vector<8x1xf32>
    %165 = arith.subf %136, %12 : vector<8x1xf32>
    %166 = arith.subf %148, %165 : vector<8x1xf32>
    %167 = arith.mulf %13, %166 : vector<8x1xf32>
    %168 = vector.shape_cast %167 : vector<8x1xf32> to vector<1x8x1xf32>
    %cst_44 = arith.constant dense<0.000000e+00> : vector<1xf32>
    %169 = vector.multi_reduction <add>, %168, %cst_44 [1, 2] : vector<1x8x1xf32> to vector<1xf32>
    %170 = vector.shape_cast %169 : vector<1xf32> to vector<1x1x1xf32>
    %171 = vector.extract %170[0, 0, 0] : f32 from vector<1x1x1xf32>
    %172 = arith.subf %34, %164 : vector<8x1xf32>
    %173 = arith.mulf %172, %11 : vector<8x1xf32>
    %174 = vector.shape_cast %173 : vector<8x1xf32> to vector<1x8x1xf32>
    %cst_45 = arith.constant dense<0.000000e+00> : vector<1xf32>
    %175 = vector.multi_reduction <add>, %174, %cst_45 [1, 2] : vector<1x8x1xf32> to vector<1xf32>
    %176 = vector.shape_cast %175 : vector<1xf32> to vector<1x1x1xf32>
    %177 = vector.extract %176[0, 0, 0] : f32 from vector<1x1x1xf32>
    %178 = vector.shape_cast %13 : vector<8x1xf32> to vector<1x8x1xf32>
    %cst_46 = arith.constant dense<0.000000e+00> : vector<1xf32>
    %179 = vector.multi_reduction <add>, %178, %cst_46 [1, 2] : vector<1x8x1xf32> to vector<1xf32>
    %180 = vector.shape_cast %179 : vector<1xf32> to vector<1x1x1xf32>
    %181 = vector.extract %180[0, 0, 0] : f32 from vector<1x1x1xf32>
    %182 = tpu.iota {dimensions = array<i32: 1>} : vector<1x128xi32>
    %cst_47 = arith.constant 0.000000e+00 : f32
    %183 = vector.broadcast %cst_47 : f32 to vector<1x128xf32>
    %c0_i32 = arith.constant 0 : i32
    %184 = vector.broadcast %c0_i32 : i32 to vector<1x128xi32>
    %185 = arith.cmpi eq, %182, %184 : vector<1x128xi32>
    %186 = vector.broadcast %181 : f32 to vector<1x128xf32>
    %187 = arith.select %185, %186, %183 : vector<1x128xi1>, vector<1x128xf32>
    %c1_i32 = arith.constant 1 : i32
    %188 = vector.broadcast %c1_i32 : i32 to vector<1x128xi32>
    %189 = arith.cmpi eq, %182, %188 : vector<1x128xi32>
    %190 = vector.broadcast %77 : f32 to vector<1x128xf32>
    %191 = arith.select %189, %190, %187 : vector<1x128xi1>, vector<1x128xf32>
    %c2_i32 = arith.constant 2 : i32
    %192 = vector.broadcast %c2_i32 : i32 to vector<1x128xi32>
    %193 = arith.cmpi eq, %182, %192 : vector<1x128xi32>
    %194 = vector.broadcast %124 : f32 to vector<1x128xf32>
    %195 = arith.select %193, %194, %191 : vector<1x128xi1>, vector<1x128xf32>
    %c3_i32 = arith.constant 3 : i32
    %196 = vector.broadcast %c3_i32 : i32 to vector<1x128xi32>
    %197 = arith.cmpi eq, %182, %196 : vector<1x128xi32>
    %198 = vector.broadcast %171 : f32 to vector<1x128xf32>
    %199 = arith.select %197, %198, %195 : vector<1x128xi1>, vector<1x128xf32>
    %c4_i32 = arith.constant 4 : i32
    %200 = vector.broadcast %c4_i32 : i32 to vector<1x128xi32>
    %201 = arith.cmpi eq, %182, %200 : vector<1x128xi32>
    %202 = vector.broadcast %83 : f32 to vector<1x128xf32>
    %203 = arith.select %201, %202, %199 : vector<1x128xi1>, vector<1x128xf32>
    %c5_i32 = arith.constant 5 : i32
    %204 = vector.broadcast %c5_i32 : i32 to vector<1x128xi32>
    %205 = arith.cmpi eq, %182, %204 : vector<1x128xi32>
    %206 = vector.broadcast %130 : f32 to vector<1x128xf32>
    %207 = arith.select %205, %206, %203 : vector<1x128xi1>, vector<1x128xf32>
    %c6_i32 = arith.constant 6 : i32
    %208 = vector.broadcast %c6_i32 : i32 to vector<1x128xi32>
    %209 = arith.cmpi eq, %182, %208 : vector<1x128xi32>
    %210 = vector.broadcast %177 : f32 to vector<1x128xf32>
    %211 = arith.select %209, %210, %207 : vector<1x128xi1>, vector<1x128xf32>
    %212 = vector.shape_cast %211 : vector<1x128xf32> to vector<1x128xf32>
    %213 = vector.broadcast %212 : vector<1x128xf32> to vector<8x128xf32>
    %214 = vector.shape_cast %213 : vector<8x128xf32> to vector<1x8x128xf32>
    %c0_48 = arith.constant 0 : index
    %c0_49 = arith.constant 0 : index
    %c0_50 = arith.constant 0 : index
    %215 = vector.load %arg7[%c0_48, %c0_49, %c0_50] : memref<1x8x128xf32, #tpu.memory_space<vmem>>, vector<1x8x128xf32>
    tpu.vector_store %arg7[%c0_48, %c0_49, %c0_50], %214 {strides = array<i32>} : memref<1x8x128xf32, #tpu.memory_space<vmem>>, vector<1x8x128xf32>,
    return
  }
  func.func @transform_0(%arg0: i32) -> (i32, i32, i32) {
    %c0_i32 = arith.constant 0 : i32
    %c0_i32_0 = arith.constant 0 : i32
    %c0_i32_1 = arith.constant 0 : i32
    return %c0_i32, %arg0, %c0_i32_0 : i32, i32, i32
  }
  func.func @transform_1(%arg0: i32) -> (i32, i32) {
    %c0_i32 = arith.constant 0 : i32
    %c0_i32_0 = arith.constant 0 : i32
    return %arg0, %c0_i32 : i32, i32
  }
  func.func @transform_2(%arg0: i32) -> (i32, i32) {
    %c0_i32 = arith.constant 0 : i32
    %c0_i32_0 = arith.constant 0 : i32
    return %arg0, %c0_i32 : i32, i32
  }
  func.func @transform_3(%arg0: i32) -> (i32, i32) {
    %c0_i32 = arith.constant 0 : i32
    %c0_i32_0 = arith.constant 0 : i32
    return %arg0, %c0_i32 : i32, i32
  }
  func.func @transform_4(%arg0: i32) -> (i32, i32) {
    %c0_i32 = arith.constant 0 : i32
    %c0_i32_0 = arith.constant 0 : i32
    return %arg0, %c0_i32 : i32, i32
  }
  func.func @transform_5(%arg0: i32) -> (i32, i32) {
    %c0_i32 = arith.constant 0 : i32
    %c0_i32_0 = arith.constant 0 : i32
    %c0_i32_1 = arith.constant 0 : i32
    return %c0_i32, %c0_i32_0 : i32, i32
  }
  func.func @transform_6(%arg0: i32) -> (i32, i32, i32) {
    %c0_i32 = arith.constant 0 : i32
    %c0_i32_0 = arith.constant 0 : i32
    %c0_i32_1 = arith.constant 0 : i32
    return %arg0, %c0_i32, %c0_i32_0 : i32, i32, i32
  }
}

</mosaic_0001>

<bundles_post_ra>
// kernel: tpu_custom_call.1
= control target key start
LH: loop header
LB: loop body
LE: loop exit
PB: predicated region body
PF: predicated region fallthrough
CT: control target
= control target key end

     0   :  { %s1277_s0 = inlined_call_operand.vmem [shape: f32[3,32,128], index: 0, kind: input, shape index: {}]   ;;  %s1278_s1 = inlined_call_operand.hbm [shape: f32[32,128], index: 1, kind: input, shape index: {}]   ;;  %s1279_s2 = inlined_call_operand.vmem [shape: s32[32,1], index: 2, kind: input, shape index: {}]   ;;  %s1280_s3 = inlined_call_operand.vmem [shape: f32[32,1], index: 3, kind: input, shape index: {}]   ;;  %s1281_s4 = inlined_call_operand.vmem [shape: f32[32,1], index: 4, kind: input, shape index: {}]   ;;  %s1282_s5 = inlined_call_operand.vmem [shape: f32[1,128], index: 5, kind: input, shape index: {}]   ;;  %s1283_s6 = inlined_call_operand.hbm [shape: f32[4,8,128], index: 6, kind: output, shape index: {}]  }
   0x1   :  { %1285 = sst [smem:[#allocation9_spill]] %s1277_s0 }
   0x2   :  { %11 = vsyncpa [#allocation4], 0 }
   0x3   :  { %13 = vsyncpa [#allocation4 + $0x1], 0 }
   0x4   :  { %14 = vsyncpa [#allocation5], 0 }
   0x5   :  { %16 = vsyncpa [#allocation5 + $0x1], 0  ;;  %s1015_s21 = smov 0   ;;  %s1017_s22 = smov 0  }
   0x6   :  { %s1019_s23 = smov 0   ;;  %s1021_s24 = smov 0  }
   0x7 LB: > { %s1036_s25 = sadd.s32 4294967295, %s974_s24   ;;  %s773_s26 = sadd.s32 4294967294, %s974_s24   ;;  %s974_s24 = sphi %s1021_s24, %s1298_s24   ;;  %s970_s23 = sphi %s1019_s23, %s1297_s23   ;;  %s966_s22 = sphi %s1017_s22, %s1296_s22   ;;  %s962_s21 = sphi %s1015_s21, %s1295_s21  }
   0x8   : > { %s1040_s27 = sadd.s32 1, %s974_s24   ;;  %s29_s28 = sadd.s32 1, %s970_s23 }
   0x9   : > { %s26_s29 = ssub.s32 %s974_s24, %s1040_s27  ;;  %p36_p0 = scmp.ne.s32.totalorder %s970_s23, %s966_s22 }
   0xa   : > { %p27_p1 = scmp.eq.s32.totalorder %s26_s29, 0  ;;  %p37_p2 = scmp.eq.s32.totalorder %s974_s24, 0 }
   0xb   : > { %p68_p3 = scmp.ne.s32.totalorder %s966_s22, %s962_s21  ;;  %p69_p4 = scmp.eq.s32.totalorder %s1036_s25, 0 }
   0xc   : > { %s1052_s30 = scalar_select %p27_p1, %s970_s23, %s29_s28  }
   0xd   : > { %p1054_p5 = por %p37_p2, %p36_p0  ;;  %p1058_p6 = por %p69_p4, %p68_p3 }
   0xe   : > { %p191_p7 = scmp.eq.s32.totalorder %s1036_s25, 3  ;;  %p197_p8 = scmp.eq.s32.totalorder %s773_s26, 3 }
   0xf   : > { %p775_p11 = scmp.ge.s32.totalorder %s974_s24, 4 }
  0x10   : > { %p1063_p9 = por %p191_p7, %p36_p0  ;;  %p1067_p10 = por %p197_p8, %p68_p3 }
  0x11   : > { %216 = sbr.rel (%p775_p11) target bundleno = 59 (0x3b), region = 20 }
  0x12   : > { %s1288_s9 = scalar_select %p1063_p9, 1, 0 }
  0x13   : > { %s1289_s10 = scalar_select %p1067_p10, 1, 0 }
  0x16   : > { %219 = sbr.rel (!%p1054_p5) target bundleno = 35 (0x23), region = 24  ;;  %s221_s11 = sand.u32 (%p1054_p5), 1, %s970_s23  }
  0x17   : > { %s776_s12 = sshll.u32 (%p1054_p5), %s974_s24, 3  ;;  %s794_s13 = smul.u32 (%p1054_p5), 24, %s221_s11 }
  0x18   : > { %s1290_s0 = sld [smem:[#allocation9_spill]] (%p1054_p5) }
  0x19   : > { %s223_s17 = scalar_lea.vmem (%p1054_p5), [#allocation2], %s794_s13 }
  0x1e   : > { %s225_s16 = scalar_lea.vmem %s1290_s0, %s776_s12 }
  0x1f   : > { %v258_v0 = vld [vmem:[%s225_s16] sm:$0xff] }
  0x20   : > { %v260_v1 = vld [vmem:[%s225_s16 + $0x20] sm:$0xff]  ;;  %259 = vst [vmem:[%s223_s17] sm:$0xff] %v258_v0 }
  0x21   : > { %v262_v2 = vld [vmem:[%s225_s16 + $0x40] sm:$0xff]  ;;  %261 = vst [vmem:[%s223_s17 + $0x8] sm:$0xff] %v260_v1 }
  0x22   : > { %263 = vst [vmem:[%s223_s17 + $0x10] sm:$0xff] %v262_v2 }
  0x23 PF: > { %s270_s18 = sand.u32 1, %s970_s23   ;;  %s778_s19 = sshll.u32 %s974_s24, 7 }
  0x24   : > { %s777_s20 = sshll.u32 %s270_s18, 3  ;;  %s1084_s29 = scalar_lea.hbm %s1278_s1, %s778_s19 }
  0x25   : > { %s274_s11 = scalar_lea.vmem [#allocation3], %s777_s20  ;;  %s271_s13 = scalar_lea.sflag [#allocation4], %s270_s18 }
  0x26   : > { %s281_s12 = sshll.u32 %s274_s11, 4  ;;  %s884_s14 = scalar_lea.hbm %s1084_s29, 128  ;;  %s282_s12 = int_to_ptr.vmem [resolvable:$true] %s281_s12 }
  0x27   : > { %p885_p12 = scmp.ne.s32.totalorder %s1084_s29, %s884_s14  ;;  %s888_s17 = scalar_lea.hbm %s1278_s1, 512 }
  0x28   : > { %p889_p1 = scmp.lt.s32.totalorder %s1084_s29, %s1278_s1  ;;  %p890_p2 = scmp.lt.s32.totalorder %s888_s17, %s884_s14 }
  0x29   : > { %p886_p13 = pnand %p885_p12, %p1054_p5 }
  0x2a   : > { %p891_p3 = por %p890_p2, %p889_p1 }
  0x2b   : > { %p887_p0 = pneg %p886_p13 }
  0x2d   : > { %p892_p4 = pnand %p891_p3, %p887_p0 }
  0x2f   : > { %895 = shalt.err (!%p892_p4)
}
  0x30   : > { %s896_s19 = scalar_lea.vmem %s282_s12, 128  ;;  %s976_s18 = smov [#allocation3]  }
  0x31   : > { %p897_p7 = scmp.ne.s32.totalorder %s282_s12, %s896_s19  ;;  %s900_s20 = sshll.u32 %s976_s18, 4  ;;  %s901_s20 = int_to_ptr.vmem [resolvable:$false] %s900_s20 }
  0x32   : > { %s902_s28 = scalar_lea.vmem %s901_s20, 256  ;;  %p903_p12 = scmp.lt.s32.totalorder %s282_s12, %s901_s20 }
  0x33   : > { %p898_p8 = pnand %p897_p7, %p1054_p5  ;;  %p904_p13 = scmp.lt.s32.totalorder %s902_s28, %s896_s19 }
  0x35   : > { %p899_p11 = pneg %p898_p8  ;;  %p905_p10 = por %p904_p13, %p903_p12 }
  0x37   : > { %p906_p9 = pnand %p905_p10, %p899_p11 }
  0x39   : > { %909 = shalt.err (!%p906_p9)
}
  0x3a   : > { %810 = dma.hbm_to_vmem [thread:$0]  (%p1054_p5), %s1084_s29, 128, %s282_s12, %s271_s13  }
  0x3b PF: > { %p779_p0 = scmp.ge.s32.totalorder %s974_s24, 1  ;;  %p307_p1 = scmp.lt.s32.totalorder %s974_s24, 5 }
  0x3d   : > { %p308_p2 = pnand %p779_p0, %p307_p1 }
  0x3e   : > { %s1105_s0 = sand.u32 (!%p308_p2), 1, %s966_s22  }
  0x3f   : > { %311 = sbr.rel (%p308_p2) target bundleno = 761 (0x2f9), region = 78  ;;  %s780_s14 = sshll.u32 (!%p308_p2), %s1105_s0, 3 }
  0x40   : > { %s795_s11 = smul.u32 (!%p308_p2), 24, %s1105_s0  ;;  %s321_s29 = scalar_lea.sflag (!%p308_p2), [#allocation4], %s1105_s0 }
  0x41   : > { %s324_s12 = scalar_lea.vmem (!%p308_p2), [#allocation3], %s780_s14 }
  0x42   : > { %s1109_s7 = scalar_lea.vmem (!%p308_p2), [#allocation2], %s795_s11 }
  0x44   : > { %953 = dma.done.wait (%p1058_p6), %s321_s29, 128  }
  0x45   : > { %955 = vsyncadd (%p1058_p6), %s321_s29, 4294967168  ;;  %p369_p5 = scmp.lt.s32.totalorder %s1036_s25, 3  ;;  %v977_v3 = vmov 0   ;;  %v1135_v5 = vld [vmem:[%s1282_s5] ss:$0 sm:$0xff]  ;;  %v399_v6 = vld [vmem:[%s324_s12] sm:$0xff]  ;;  %v382_v13 = vlaneseq }
  0x46   : > { %853 = vset.pattern.permute.xlu0 %v977_v3  ;;  %v1139_v7 = vld [vmem:[%s1109_s7 + $0x8] sm:$0xff]  ;;  %v406_v9 = vmul.f32 %v1135_v5, %v399_v6  ;;  %v1145_v11 = vld [vmem:[%s1109_s7] sm:$0xff]  ;;  %v1163_v21 = vld [vmem:[%s1109_s7 + $0x10] sm:$0xff]  ;;  %s785_s11 = sshll.u32 %s1036_s25, 3  ;;  %vm464_vm2 = vcmask 7168   ;;  %s368_s20 = scalar_lea.vmem [#allocation6], %s780_s14 }
  0x47   : > { %s370_s13 = scalar_select %p369_p5, %s1036_s25, 3  ;;  %v504_v10 = vmul.f32 %v1139_v7, %v1135_v5  ;;  %v445_v12 = vmul.f32 %v1135_v5, %v1145_v11  ;;  %v1150_v15 = vand.u32 127, %v382_v13  ;;  %v562_v25 = vmul.f32 %v1163_v21, %v1135_v5 }
  0x48   : > { %407 = vmax.xlane.f32.xlu1 %v406_v9  ;;  %s649_s28 = sshll.u32 %s368_s20, 4  ;;  %p1293_p9 = scmp.ne.s32.totalorder %s1288_s9, 0  ;;  %s650_s28 = int_to_ptr.vmem [resolvable:$true] %s649_s28 }
  0x49   : > { %s1120_s15 = sshll.u32 %s370_s13, 3  ;;  %vm613_vm3 = vcmp.eq.s32.totalorder %v1150_v15, 0  ;;  %vm616_vm4 = vcmp.eq.s32.totalorder %v1150_v15, 1  ;;  %vm619_vm5 = vcmp.eq.s32.totalorder %v1150_v15, 2  ;;  %vm622_vm6 = vcmp.eq.s32.totalorder %v1150_v15, 3  ;;  %s910_s14 = scalar_lea.vmem %s650_s28, 128 }
  0x4a   : > { %s376_s26 = scalar_lea.vmem %s1280_s3, %s1120_s15  ;;  %s372_s8 = scalar_lea.vmem %s1279_s2, %s1120_s15  ;;  %vm625_vm7 = vcmp.eq.s32.totalorder %v1150_v15, 4  ;;  %vm628_vm8 = vcmp.eq.s32.totalorder %v1150_v15, 5  ;;  %vm631_vm9 = vcmp.eq.s32.totalorder %v1150_v15, 6 }
  0x4b   : > { %v1130_v4 = vld [vmem:[%s376_s26] sm:$0xff]  ;;  %s380_s12 = scalar_lea.vmem %s1281_s4, %s1120_s15  ;;  %p911_p6 = scmp.ne.s32.totalorder %s650_s28, %s910_s14 }
  0x4c   : > { %430 = vperm.xlu0 %853, %v1130_v4   ;;  %v381_v8 = vld [vmem:[%s372_s8] sm:$0xff]  ;;  %505 = vmax.xlane.f32.xlu1 %v504_v10  ;;  %s791_s8 = sshll.u32 %s1036_s25, 7  ;;  %s636_s25 = scalar_lea.sflag [#allocation5], %s1105_s0 }
  0x4d   : > { %s1241_s29 = scalar_lea.hbm %s1283_s6, %s791_s8  ;;  %p912_p10 = pnand %p911_p6, %p1293_p9 }
  0x4f   : > { %p913_p3 = pneg %p912_p10 }
  0x50   : > { %385 = vperm.xlu0 %853, %v381_v8   ;;  %v391_v8 = vstv %s785_s11 }
  0x6f   : > { %446 = vmax.xlane.f32.xlu0 %v445_v12 }
  0xc7   : > { %v431_v14 = vpop.permute.xlu0 %430 }
  0xc8   : > { %v433_v16 = vsub.f32 %v1145_v11, %v431_v14  ;;  %v492_v20 = vsub.f32 %v1139_v7, %v431_v14  ;;  %v550_v23 = vsub.f32 %v1163_v21, %v431_v14 }
  0xcb   : > { %v386_v17 = vpop.permute.xlu0 %385 }
  0xcc   : > { %vm1154_vm0 = vcmp.eq.s32.totalorder %v1150_v15, %v386_v17 }
  0xcd   : > { %v434_v19 = vsel %vm1154_vm0, %v433_v16, %v1145_v11  ;;  %v493_v22 = vsel %vm1154_vm0, %v492_v20, %v1139_v7  ;;  %v551_v24 = vsel %vm1154_vm0, %v550_v23, %v1163_v21  ;;  %v425_v59 = vsel %vm1154_vm0, %v1145_v11, 0.0 }
  0xce   : > { %435 = vmax.xlane.f32.xlu1 %v434_v19  ;;  %v489_v60 = vsel %vm1154_vm0, %v1139_v7, 0.0  ;;  %v547_v61 = vsel %vm1154_vm0, %v1163_v21, 0.0 }
  0xd1   : > { %v408_v26 = vpop.xlane.xlu1 %407 }
  0xd2   : > { %494 = vmax.xlane.f32.xlu1 %v493_v22  ;;  %v409_v27 = vsub.f32 %v406_v9, %v408_v26 }
  0xd4   : > { %v410_v28 = vmul.f32 1.442695, %v409_v27 }
  0xd5   : > { %v1174_v29 = vpop.xlane.xlu1 %505 }
  0xd6   : > { %552 = vmax.xlane.f32.xlu1 %v551_v24  ;;  %854 = vpow2.f32 %v410_v28  ;;  %v507_v30 = vsub.f32 %v504_v10, %v1174_v29 }
  0xd8   : > { %v508_v31 = vmul.f32 1.442695, %v507_v30 }
  0xda   : > { %563 = vmax.xlane.f32.xlu1 %v562_v25  ;;  %856 = vpow2.f32 %v508_v31 }
  0xe3   : > { %v855_v32 = vpop.eup %854 }
  0xe4   : > { %412 = vadd.xlane.f32.xlu1 %v855_v32  ;;  %v418_v33 = vmul.f32 %v855_v32, %v409_v27  ;;  %v423_v53 = vmul.f32 %v855_v32, %v1135_v5 }
  0xe6   : > { %v453_v55 = vmul.f32 %v1145_v11, %v423_v53  ;;  %v512_v57 = vmul.f32 %v1139_v7, %v423_v53  ;;  %v570_v58 = vmul.f32 %v1163_v21, %v423_v53  ;;  %v390_v7 = vshrl.u32 %v382_v13, 7 }
  0xe7   : > { %v857_v34 = vpop.eup %856 }
  0xe8   : > { %510 = vadd.xlane.f32.xlu0 %v857_v34  ;;  %v392_v17 = vadd.s32 %v391_v8, %v390_v7 }
  0xea   : > { %vm393_vm1 = vcmp.lt.s32.totalorder %v392_v17, 30 }
  0xf8   : > { %v1177_v35 = vpop.xlane.xlu0 %446 }
  0xf9   : > { %v448_v36 = vsub.f32 %v445_v12, %v1177_v35 }
  0xfb   : > { %v449_v37 = vmul.f32 1.442695, %v448_v36 }
  0xfd   : > { %858 = vpow2.f32 %v449_v37  ;;  %v397_v37 = vld [vmem:[%s380_s12] sm:$0xff]  ;;  %s979_s12 = smov [#allocation6]  }
 0x10a   : > { %v859_v38 = vpop.eup %858 }
 0x10b   : > { %451 = vadd.xlane.f32.xlu1 %v859_v38 }
 0x157   : > { %v1180_v39 = vpop.xlane.xlu1 %435 }
 0x158   : > { %v437_v40 = vsub.f32 %v434_v19, %v1180_v39 }
 0x15a   : > { %v438_v41 = vmul.f32 1.442695, %v437_v40 }
 0x15b   : > { %v1183_v42 = vpop.xlane.xlu1 %494 }
 0x15c   : > { %860 = vpow2.f32 %v438_v41  ;;  %v496_v43 = vsub.f32 %v493_v22, %v1183_v42 }
 0x15e   : > { %v497_v44 = vmul.f32 1.442695, %v496_v43 }
 0x15f   : > { %v1186_v45 = vpop.xlane.xlu1 %552 }
 0x160   : > { %862 = vpow2.f32 %v497_v44  ;;  %v554_v46 = vsub.f32 %v551_v24, %v1186_v45 }
 0x162   : > { %v555_v47 = vmul.f32 1.442695, %v554_v46 }
 0x163   : > { %v1189_v48 = vpop.xlane.xlu1 %563 }
 0x164   : > { %864 = vpow2.f32 %v555_v47  ;;  %v565_v49 = vsub.f32 %v562_v25, %v1189_v48  ;;  %v978_v47 = vmov 0.0  }
 0x166   : > { %v566_v50 = vmul.f32 1.442695, %v565_v49 }
 0x168   : > { %866 = vpow2.f32 %v566_v50 }
 0x169   : > { %v861_v51 = vpop.eup %860 }
 0x16a   : > { %440 = vadd.xlane.f32.xlu1 %v861_v51 }
 0x16d   : > { %v863_v52 = vpop.eup %862  ;;  %v413_v62 = vpop.xlane.xlu1 %412 }
 0x16e   : > { %499 = vadd.xlane.f32.xlu1 %v863_v52 }
 0x171   : > { %v865_v54 = vpop.eup %864  ;;  %v511_v1 = vpop.xlane.xlu0 %510 }
 0x172   : > { %557 = vadd.xlane.f32.xlu1 %v865_v54 }
 0x175   : > { %v867_v56 = vpop.eup %866 }
 0x176   : > { %568 = vadd.xlane.f32.xlu0 %v867_v56  ;;  %454 = vadd.xlane.f32.xlu1 %v453_v55 }
 0x17a   : > { %513 = vadd.xlane.f32.xlu0 %v512_v57  ;;  %571 = vadd.xlane.f32.xlu1 %v570_v58 }
 0x17e   : > { %419 = vadd.xlane.f32.xlu0 %v418_v33  ;;  %426 = vadd.xlane.f32.xlu1 %v425_v59 }
 0x182   : > { %490 = vadd.xlane.f32.xlu0 %v489_v60  ;;  %548 = vadd.xlane.f32.xlu1 %v547_v61 }
 0x194   : > { %v452_v63 = vpop.xlane.xlu1 %451 }
 0x1f3   : > { %v441_v0 = vpop.xlane.xlu1 %440 }
 0x1f4   : > { %868 = vlog2.f32 %v441_v0 }
 0x1f5   : > { %870 = vrcp.f32 %v413_v62 }
 0x1f6   : > { %872 = vlog2.f32 %v413_v62 }
 0x1f7   : > { %874 = vlog2.f32 %v511_v1  ;;  %v500_v2 = vpop.xlane.xlu1 %499 }
 0x1f8   : > { %876 = vlog2.f32 %v500_v2 }
 0x1f9   : > { %878 = vlog2.f32 %v452_v63 }
 0x1fb   : > { %v558_v3 = vpop.xlane.xlu1 %557 }
 0x1fc   : > { %880 = vlog2.f32 %v558_v3 }
 0x1ff   : > { %v455_v5 = vpop.xlane.xlu1 %454  ;;  %v569_v6 = vpop.xlane.xlu0 %568 }
 0x200   : > { %882 = vlog2.f32 %v569_v6 }
 0x201   : > { %v869_v9 = vpop.eup %868 }
 0x202   : > { %v871_v10 = vpop.eup %870  ;;  %v443_v19 = vmul.f32 0.6931472, %v869_v9 }
 0x203   : > { %v873_v11 = vpop.eup %872  ;;  %v456_v12 = vmul.f32 %v871_v10, %v455_v5  ;;  %v572_v14 = vpop.xlane.xlu1 %571  ;;  %v603_v5 = vsel %vm464_vm2, %v397_v37, 0.0 }
 0x204   : > { %v514_v16 = vpop.xlane.xlu0 %513  ;;  %v875_v18 = vpop.eup %874  ;;  %v417_v23 = vmul.f32 0.6931472, %v873_v11  ;;  %v444_v28 = vadd.f32 %v443_v19, %v1180_v39  ;;  %v573_v36 = vmul.f32 %v871_v10, %v572_v14  ;;  %v786_v39 = vsel %vm393_vm1, 1.0, %v978_v47 }
 0x205   : > { %v515_v20 = vmul.f32 %v871_v10, %v514_v16  ;;  %v877_v21 = vpop.eup %876  ;;  %v457_v24 = vsub.f32 %v456_v12, %v1177_v35  ;;  %v518_v34 = vmul.f32 0.6931472, %v875_v18 }
 0x206   : > { %v879_v22 = vpop.eup %878  ;;  %v502_v13 = vmul.f32 0.6931472, %v877_v21  ;;  %v574_v54 = vsub.f32 %v573_v36, %v1189_v48 }
 0x207   : > { %v516_v25 = vsub.f32 %v515_v20, %v1174_v29  ;;  %v427_v26 = vpop.xlane.xlu1 %426  ;;  %v459_v33 = vmul.f32 0.6931472, %v879_v22 }
 0x208   : > { %v420_v27 = vpop.xlane.xlu0 %419  ;;  %v461_v30 = vsub.f32 %v427_v26, %v1130_v4  ;;  %v503_v44 = vadd.f32 %v502_v13, %v1183_v42 }
 0x209   : > { %v421_v31 = vmul.f32 %v871_v10, %v420_v27  ;;  %v881_v32 = vpop.eup %880  ;;  %v460_v35 = vsub.f32 %v457_v24, %v459_v33  ;;  %v519_v43 = vsub.f32 %v516_v25, %v518_v34 }
 0x20a   : > { %v560_v38 = vmul.f32 0.6931472, %v881_v32  ;;  %v462_v40 = vsub.f32 %v444_v28, %v461_v30 }
 0x20b   : > { %v422_v41 = vsub.f32 %v421_v31, %v417_v23  ;;  %v549_v29 = vpop.xlane.xlu1 %548 }
 0x20c   : > { %v491_v46 = vpop.xlane.xlu0 %490  ;;  %v561_v49 = vadd.f32 %v560_v38, %v1186_v45  ;;  %v578_v50 = vsub.f32 %v549_v29, %v1130_v4  ;;  %v463_v52 = vmul.f32 %v462_v40, %v397_v37 }
 0x20d   : > { %v520_v51 = vsub.f32 %v491_v46, %v1130_v4  ;;  %v883_v53 = vpop.eup %882  ;;  %v475_v55 = vsub.f32 %v422_v41, %v460_v35  ;;  %v533_v56 = vsub.f32 %v422_v41, %v519_v43 }
 0x20e   : > { %v576_v57 = vmul.f32 0.6931472, %v883_v53  ;;  %v579_v58 = vsub.f32 %v561_v49, %v578_v50  ;;  %v465_v42 = vsel %vm464_vm2, %v463_v52, 0.0 }
 0x20f   : > { %v521_v59 = vsub.f32 %v503_v44, %v520_v51  ;;  %466 = vadd.xlane.f32.xlu0 %v465_v42  ;;  %v476_v60 = vmul.f32 %v786_v39, %v475_v55  ;;  %v534_v63 = vmul.f32 %v786_v39, %v533_v56 }
 0x210   : > { %v577_v61 = vsub.f32 %v574_v54, %v576_v57  ;;  %v580_v0 = vmul.f32 %v579_v58, %v397_v37 }
 0x211   : > { %v522_v62 = vmul.f32 %v521_v59, %v397_v37  ;;  %v477_v45 = vsel %vm464_vm2, %v476_v60, 0.0  ;;  %v535_v48 = vsel %vm464_vm2, %v534_v63, 0.0 }
 0x212   : > { %478 = vadd.xlane.f32.xlu1 %v477_v45  ;;  %v591_v1 = vsub.f32 %v422_v41, %v577_v61  ;;  %v581_v3 = vsel %vm464_vm2, %v580_v0, 0.0 }
 0x213   : > { %v523_v4 = vsel %vm464_vm2, %v522_v62, 0.0 }
 0x214   : > { %524 = vadd.xlane.f32.xlu0 %v523_v4  ;;  %v592_v2 = vmul.f32 %v786_v39, %v591_v1 }
 0x216   : > { %536 = vadd.xlane.f32.xlu1 %v535_v48  ;;  %v593_v6 = vsel %vm464_vm2, %v592_v2, 0.0 }
 0x218   : > { %582 = vadd.xlane.f32.xlu0 %v581_v3 }
 0x21a   : > { %594 = vadd.xlane.f32.xlu1 %v593_v6 }
 0x21c   : > { %604 = vadd.xlane.f32.xlu0 %v603_v5 }
 0x298   : > { %v467_v7 = vpop.xlane.xlu0 %466 }
 0x299   : > { %v468_v8 = vrot.slane %v467_v7, 4 }
 0x29b   : > { %v469_v9 = vadd.f32 %v468_v8, %v467_v7  ;;  %v479_v10 = vpop.xlane.xlu1 %478 }
 0x29c   : > { %v480_v11 = vrot.slane %v479_v10, 4 }
 0x29d   : > { %v525_v12 = vpop.xlane.xlu0 %524  ;;  %v470_v14 = vrot.slane %v469_v9, 2 }
 0x29e   : > { %v526_v16 = vrot.slane %v525_v12, 4  ;;  %v481_v17 = vadd.f32 %v480_v11, %v479_v10 }
 0x29f   : > { %v537_v19 = vpop.xlane.xlu1 %536  ;;  %v471_v20 = vadd.f32 %v470_v14, %v469_v9 }
 0x2a0   : > { %v527_v18 = vadd.f32 %v526_v16, %v525_v12  ;;  %v482_v21 = vrot.slane %v481_v17, 2  ;;  %v538_v22 = vrot.slane %v537_v19, 4 }
 0x2a1   : > { %v583_v23 = vpop.xlane.xlu0 %582  ;;  %v472_v25 = vrot.slane %v471_v20, 1 }
 0x2a2   : > { %v528_v13 = vrot.slane %v527_v18, 2  ;;  %v584_v24 = vrot.slane %v583_v23, 4  ;;  %v539_v26 = vadd.f32 %v538_v22, %v537_v19  ;;  %v483_v27 = vadd.f32 %v482_v21, %v481_v17 }
 0x2a3   : > { %v595_v30 = vpop.xlane.xlu1 %594  ;;  %v473_v31 = vadd.f32 %v472_v25, %v471_v20 }
 0x2a4   : > { %v585_v28 = vadd.f32 %v584_v24, %v583_v23  ;;  %v529_v32 = vadd.f32 %v528_v13, %v527_v18  ;;  %v540_v33 = vrot.slane %v539_v26, 2  ;;  %v596_v34 = vrot.slane %v595_v30, 4 }
 0x2a5   : > { %v605_v36 = vpop.xlane.xlu0 %604  ;;  %v484_v37 = vrot.slane %v483_v27, 1  ;;  %796 = vpush %v473_v31 }
 0x2a6   : > { %v586_v38 = vrot.slane %v585_v28, 2  ;;  %v606_v40 = vrot.slane %v605_v36, 4  ;;  %v530_v41 = vrot.slane %v529_v32, 1  ;;  %v597_v35 = vadd.f32 %v596_v34, %v595_v30 }
 0x2a7   : > { %v485_v43 = vadd.f32 %v484_v37, %v483_v27  ;;  %v541_v29 = vadd.f32 %v540_v33, %v539_v26 }
 0x2a8   : > { %v607_v44 = vadd.f32 %v606_v40, %v605_v36  ;;  %v531_v46 = vadd.f32 %v530_v41, %v529_v32  ;;  %v587_v47 = vadd.f32 %v586_v38, %v585_v28  ;;  %v598_v39 = vrot.slane %v597_v35, 2 }
 0x2a9   : > { %798 = vpush %v485_v43  ;;  %v542_v49 = vrot.slane %v541_v29, 1 }
 0x2aa   : > { %v608_v50 = vrot.slane %v607_v44, 2  ;;  %800 = vpush %v531_v46  ;;  %v588_v51 = vrot.slane %v587_v47, 1  ;;  %v599_v52 = vadd.f32 %v598_v39, %v597_v35 }
 0x2ab   : > { %v543_v53 = vadd.f32 %v542_v49, %v541_v29 }
 0x2ac   : > { %v609_v54 = vadd.f32 %v608_v50, %v607_v44  ;;  %v589_v55 = vadd.f32 %v588_v51, %v587_v47  ;;  %v600_v56 = vrot.slane %v599_v52, 1 }
 0x2ad   : > { %802 = vpush %v543_v53 }
 0x2ae   : > { %804 = vpush %v589_v55  ;;  %v610_v57 = vrot.slane %v609_v54, 1  ;;  %v601_v58 = vadd.f32 %v600_v56, %v599_v52 }
 0x2b0   : > { %v611_v59 = vadd.f32 %v610_v57, %v609_v54  ;;  %806 = vpush %v601_v58 }
 0x2b2   : > { %808 = vpush %v611_v59 }
 0x2d6   : > { %s797_s13 = spop %796 }
 0x2d7   : > { %v617_v60 = vstv %s797_s13  ;;  %s914_s13 = sshll.u32 %s979_s12, 4  ;;  %s915_s13 = int_to_ptr.vmem [resolvable:$false] %s914_s13 }
 0x2d8   : > { %p917_p4 = scmp.lt.s32.totalorder %s650_s28, %s915_s13 }
 0x2da   : > { %s799_s15 = spop %798 }
 0x2db   : > { %s801_s16 = spop %800  ;;  %v626_v0 = vstv %s799_s15  ;;  %s916_s15 = scalar_lea.vmem %s915_s13, 256 }
 0x2dc   : > { %v620_v62 = vstv %s801_s16  ;;  %p918_p7 = scmp.lt.s32.totalorder %s916_s15, %s910_s14 }
 0x2de   : > { %s803_s17 = spop %802  ;;  %p919_p8 = por %p918_p7, %p917_p4 }
 0x2df   : > { %s805_s26 = spop %804  ;;  %v629_v48 = vstv %s803_s17 }
 0x2e0   : > { %v623_v63 = vstv %s805_s26  ;;  %p920_p11 = pnand %p919_p8, %p913_p3 }
 0x2e1   : > { %s807_s19 = spop %806 }
 0x2e2   : > { %v632_v3 = vstv %s807_s19 }
 0x2e3   : > { %s809_s18 = spop %808 }
 0x2e4   : > { %v614_v42 = vstv %s809_s18 }
 0x2e5   : > { %v615_v61 = vsel %vm613_vm3, %v614_v42, 0.0 }
 0x2e6   : > { %v618_v45 = vsel %vm616_vm4, %v617_v60, %v615_v61 }
 0x2e7   : > { %v621_v4 = vsel %vm619_vm5, %v620_v62, %v618_v45 }
 0x2e8   : > { %v624_v1 = vsel %vm622_vm6, %v623_v63, %v621_v4 }
 0x2e9   : > { %v627_v2 = vsel %vm625_vm7, %v626_v0, %v624_v1 }
 0x2ea   : > { %v630_v5 = vsel %vm628_vm8, %v629_v48, %v627_v2 }
 0x2eb   : > { %v633_v6 = vsel %vm631_vm9, %v632_v3, %v630_v5 }
 0x2ec   : > { %634 = vst [vmem:[%s368_s20] sm:$0xff] %v633_v6 }
 0x2ed   : > { %923 = shalt.err (!%p920_p11)
}
 0x2ee   : > { %s924_s16 = scalar_lea.hbm %s1241_s29, 128  ;;  %s928_s26 = scalar_lea.hbm %s1283_s6, 512 }
 0x2ef   : > { %p925_p12 = scmp.ne.s32.totalorder %s1241_s29, %s924_s16  ;;  %p929_p1 = scmp.lt.s32.totalorder %s1241_s29, %s1283_s6 }
 0x2f0   : > { %p930_p2 = scmp.lt.s32.totalorder %s928_s26, %s924_s16 }
 0x2f1   : > { %p926_p13 = pnand %p925_p12, %p1293_p9 }
 0x2f2   : > { %p931_p5 = por %p930_p2, %p929_p1 }
 0x2f3   : > { %p927_p0 = pneg %p926_p13 }
 0x2f5   : > { %p932_p6 = pnand %p931_p5, %p927_p0 }
 0x2f7   : > { %935 = shalt.err (!%p932_p6)
}
 0x2f8   : > { %812 = dma.vmem_to_hbm [thread:$0]  (%p1293_p9), %s650_s28, 128, %s1241_s29, %s636_s25  }
 0x2f9 PF: > { %p818_p10 = scmp.ge.s32.totalorder %s974_s24, 2  ;;  %s661_s8 = sand.u32 1, %s962_s21  }
 0x2fa   : > { %p1294_p3 = scmp.ne.s32.totalorder %s1289_s10, 0  ;;  %s662_s20 = scalar_lea.sflag [#allocation5], %s661_s8 }
 0x2fc   : > { %p815_p4 = pnand %p818_p10, %p1294_p3 }
 0x2fe   : > { %p816_p7 = pneg %p815_p4 }
 0x300   : > { %957 = dma.done.wait (%p816_p7), %s662_s20, 128  }
 0x301   : > { %959 = vsyncadd (%p816_p7), %s662_s20, 4294967168  ;;  %p19_p8 = scmp.ge.s32.totalorder %s1040_s27, 6   ;;  %s1295_s21 = smov %s966_s22 }
 0x302   : > { %s1296_s22 = smov %s970_s23  ;;  %s1297_s23 = smov %s1052_s30 }
 0x303   : > { %s1298_s24 = smov %s1040_s27  ;;  %21 = sbr.rel (!%p19_p8) target bundleno = 7 (0x7), region = 146 }
 0x308   :  { %667 = vsyncpa [#allocation4], 1 }
 0x309   :  { %669 = vsyncpa [#allocation4 + $0x1], 1 }
 0x30a   :  { %670 = vsyncpa [#allocation5], 1 }
 0x30b   :  { %672 = vsyncpa [#allocation5 + $0x1], 1 }

</bundles_post_ra>
